<compile_context>
chip_gen: v7x
topology: tpu7x:2x2x1
jax: 0.10.0
libtpu: 0.0.40
codegen_flags: <defaults>
</compile_context>

<pallas_src>
import functools

import jax
import jax.numpy as jnp
from jax.experimental import pallas as pl
from jax.experimental.pallas import tpu as pltpu

LANE = 128
_MAX_LANE_TILE = 2048                  # lanes per block (multiple of 128)
_BLOCK_BYTES_BUDGET = 8 * 1024 * 1024  # VMEM-padded bytes per input block
_VMEM_SLACK = 8 * 1024 * 1024
_VMEM_FLOOR = 32 * 1024 * 1024
_VMEM_CAP = 64 * 1024 * 1024           # v7x physical VMEM per TensorCore
_MAX_B_TILE = 256                      # cap on leading-dim fold


def _round_up(x, m):
    return (x + m - 1) // m * m


def _acc_dtype(dtype):
    return jnp.float32 if jnp.issubdtype(dtype, jnp.floating) else jnp.int32


def _vmem_limit(vmem_need):
    return int(min(_VMEM_CAP, max(_VMEM_FLOOR, vmem_need + _VMEM_SLACK)))


# ----------------------------------------------------------------------------
# Kernels: general path (reduce over the sublane axis)
# ----------------------------------------------------------------------------
def _sum_general_onepass_kernel(x_ref, o_ref, *, acc_dtype):
    # x_ref: (b_tile, R, t_lanes); o_ref: (b_tile, 1, t_lanes)
    x = x_ref[...].astype(acc_dtype)
    o_ref[...] = jnp.sum(x, axis=1, keepdims=True).astype(o_ref.dtype)


def _sum_general_multipass_kernel(x_ref, o_ref, acc_ref, *,
                                  r_total, r_tile, need_r_mask):
    # x_ref: (r_tile, t_lanes); o_ref: (1, t_lanes); acc_ref: (1, t_lanes)
    r = pl.program_id(2)
    last = pl.num_programs(2) - 1

    @pl.when(r == 0)
    def _():
        acc_ref[...] = jnp.zeros_like(acc_ref)

    x = x_ref[...].astype(acc_ref.dtype)

    if need_r_mask:
        # Mask only the final (partial) R tile: keeps iota/compare/select off
        # the hot loop.
        @pl.when(r < last)
        def _():
            acc_ref[...] += jnp.sum(x, axis=0, keepdims=True)

        @pl.when(r == last)
        def _():
            rows_left = r_total - r * r_tile
            row_ids = jax.lax.broadcasted_iota(jnp.int32, x.shape, 0)
            xm = jnp.where(row_ids < rows_left, x, jnp.zeros_like(x))
            acc_ref[...] += jnp.sum(xm, axis=0, keepdims=True)
    else:
        acc_ref[...] += jnp.sum(x, axis=0, keepdims=True)

    @pl.when(r == last)
    def _():
        o_ref[...] = acc_ref[...].astype(o_ref.dtype)


# ----------------------------------------------------------------------------
# Kernels: last-axis path (M == 1, reduce over the lane axis)
# ----------------------------------------------------------------------------
def _sum_lastdim_onepass_kernel(x_ref, o_ref, *, acc_dtype):
    # x_ref: (b_tile, R); o_ref: (b_tile, 1)
    x = x_ref[...].astype(acc_dtype)
    o_ref[...] = jnp.sum(x, axis=1, keepdims=True).astype(o_ref.dtype)


def _sum_lastdim_multipass_kernel(x_ref, o_ref, acc_ref, *,
                                  r_total, r_lanes, need_mask):
    # x_ref: (b_tile, r_lanes); o_ref / acc_ref: (b_tile, 1)
    r = pl.program_id(1)
    last = pl.num_programs(1) - 1

    @pl.when(r == 0)
    def _():
        acc_ref[...] = jnp.zeros_like(acc_ref)

    x = x_ref[...].astype(acc_ref.dtype)

    if need_mask:
        @pl.when(r < last)
        def _():
            acc_ref[...] += jnp.sum(x, axis=1, keepdims=True)

        @pl.when(r == last)
        def _():
            cols_left = r_total - r * r_lanes
            col_ids = jax.lax.broadcasted_iota(jnp.int32, x.shape, 1)
            xm = jnp.where(col_ids < cols_left, x, jnp.zeros_like(x))
            acc_ref[...] += jnp.sum(xm, axis=1, keepdims=True)
    else:
        acc_ref[...] += jnp.sum(x, axis=1, keepdims=True)

    @pl.when(r == last)
    def _():
        o_ref[...] = acc_ref[...].astype(o_ref.dtype)


# ----------------------------------------------------------------------------
# Wrappers
# ----------------------------------------------------------------------------
def _sum_general(x3, B, R, M, itemsize, pack, acc_dtype, block_bytes, lane_cap):
    # Lane tile: full M if it fits one vreg row, else a multiple of 128.
    if M <= LANE:
        t_lanes = M
    else:
        t_lanes = min(lane_cap, _round_up(M, LANE))
    n_lane = pl.cdiv(M, t_lanes)

    # v7x megacore: with B == 1 and a single lane tile only one TensorCore
    # would get work; split the lane axis when it is wide enough.
    if B == 1 and n_lane == 1 and M >= 2 * LANE:
        t_lanes = _round_up(pl.cdiv(M, 2), LANE)
        n_lane = pl.cdiv(M, t_lanes)

    padded_lanes = _round_up(t_lanes, LANE)        # VMEM pads lanes to 128
    row_bytes = padded_lanes * itemsize
    max_rows = max(pack, block_bytes // row_bytes)

    if R <= max_rows:
        # Whole reduction fits one block: fold part of B to amortize the
        # ~0.35us/step overhead and make output stores sublane-dense.
        r_tile = R
        n_r = 1
        need_r_mask = False
        rows_per_b = _round_up(R, pack)
        b_tile = min(B, _MAX_B_TILE, max(1, max_rows // rows_per_b))
    else:
        r_tile = max(pack, (max_rows // pack) * pack)
        n_r = pl.cdiv(R, r_tile)
        need_r_mask = (R % r_tile) != 0
        b_tile = 1
    n_b = pl.cdiv(B, b_tile)

    in_block = b_tile * _round_up(r_tile, pack) * padded_lanes * itemsize
    out_block = b_tile * pack * padded_lanes * itemsize
    acc_bytes = 0 if n_r == 1 else 8 * padded_lanes * 4
    vmem_limit = _vmem_limit(2 * in_block + 2 * out_block + acc_bytes)

    if n_r == 1:
        kernel = functools.partial(_sum_general_onepass_kernel,
                                   acc_dtype=acc_dtype)
        return pl.pallas_call(
            kernel,
            out_shape=jax.ShapeDtypeStruct((B, 1, M), x3.dtype),
            grid_spec=pltpu.PrefetchScalarGridSpec(
                num_scalar_prefetch=0,
                grid=(n_b, n_lane),
                in_specs=[pl.BlockSpec((b_tile, R, t_lanes),
                                       lambda b, j: (b, 0, j))],
                out_specs=pl.BlockSpec((b_tile, 1, t_lanes),
                                       lambda b, j: (b, 0, j)),
            ),
            compiler_params=pltpu.CompilerParams(
                dimension_semantics=("parallel", "parallel"),
                vmem_limit_bytes=vmem_limit),
        )(x3)

    kernel = functools.partial(
        _sum_general_multipass_kernel,
        r_total=R, r_tile=r_tile, need_r_mask=need_r_mask)
    return pl.pallas_call(
        kernel,
        out_shape=jax.ShapeDtypeStruct((B, 1, M), x3.dtype),
        grid_spec=pltpu.PrefetchScalarGridSpec(
            num_scalar_prefetch=0,
            grid=(n_b, n_lane, n_r),
            in_specs=[pl.BlockSpec((None, r_tile, t_lanes),
                                   lambda b, j, r: (b, r, j))],
            out_specs=pl.BlockSpec((None, 1, t_lanes),
                                   lambda b, j, r: (b, 0, j)),
            scratch_shapes=[pltpu.VMEM((1, t_lanes), acc_dtype)],
        ),
        compiler_params=pltpu.CompilerParams(
            dimension_semantics=("parallel", "parallel", "arbitrary"),
            vmem_limit_bytes=vmem_limit),
    )(x3)


def _sum_last_axis(x2, B, R, itemsize, pack, acc_dtype, block_bytes, lane_cap):
    # Reducing the last axis: R on lanes (lane-dense), B on sublanes.
    if R <= lane_cap:
        r_lanes = R
        n_r = 1
        need_mask = False
    else:
        r_lanes = lane_cap
        n_r = pl.cdiv(R, r_lanes)
        need_mask = (R % r_lanes) != 0

    padded_lanes = _round_up(r_lanes, LANE)
    row_bytes = padded_lanes * itemsize
    max_rows = max(pack, block_bytes // row_bytes)
    if B <= max_rows:
        b_tile = B
    else:
        b_tile = max(pack, (max_rows // pack) * pack)
    n_b = pl.cdiv(B, b_tile)

    # v7x megacore: ensure the parallel B axis has >= 2 grid points.
    if n_b == 1 and B >= 2 * pack:
        b_tile = _round_up(pl.cdiv(B, 2), pack)
        n_b = pl.cdiv(B, b_tile)

    in_block = _round_up(b_tile, pack) * padded_lanes * itemsize
    out_block = _round_up(b_tile, 8) * LANE * itemsize
    acc_bytes = 0 if n_r == 1 else _round_up(b_tile, 8) * LANE * 4
    vmem_limit = _vmem_limit(2 * in_block + 2 * out_block + acc_bytes)

    if n_r == 1:
        kernel = functools.partial(_sum_lastdim_onepass_kernel,
                                   acc_dtype=acc_dtype)
        return pl.pallas_call(
            kernel,
            out_shape=jax.ShapeDtypeStruct((B, 1), x2.dtype),
            grid_spec=pltpu.PrefetchScalarGridSpec(
                num_scalar_prefetch=0,
                grid=(n_b,),
                in_specs=[pl.BlockSpec((b_tile, R), lambda b: (b, 0))],
                out_specs=pl.BlockSpec((b_tile, 1), lambda b: (b, 0)),
            ),
            compiler_params=pltpu.CompilerParams(
                dimension_semantics=("parallel",),
                vmem_limit_bytes=vmem_limit),
        )(x2)

    kernel = functools.partial(_sum_lastdim_multipass_kernel,
                               r_total=R, r_lanes=r_lanes, need_mask=need_mask)
    return pl.pallas_call(
        kernel,
        out_shape=jax.ShapeDtypeStruct((B, 1), x2.dtype),
        grid_spec=pltpu.PrefetchScalarGridSpec(
            num_scalar_prefetch=0,
            grid=(n_b, n_r),
            in_specs=[pl.BlockSpec((b_tile, r_lanes), lambda b, r: (b, r))],
            out_specs=pl.BlockSpec((b_tile, 1), lambda b, r: (b, 0)),
            scratch_shapes=[pltpu.VMEM((b_tile, 1), acc_dtype)],
        ),
        compiler_params=pltpu.CompilerParams(
            dimension_semantics=("parallel", "arbitrary"),
            vmem_limit_bytes=vmem_limit),
    )(x2)


def pallas_sum(x, dim: int, *, block_bytes: int = _BLOCK_BYTES_BUDGET,
               max_lane_tile: int = _MAX_LANE_TILE):
    """Equivalent of torch.sum(x, dim=dim) (no keepdim)."""
    # TODO(synk): dim=None (full reduction) is not implemented; the original
    # module's `assert dim >= 0` rejects None anyway.
    # TODO(synk): small-int/bool inputs accumulate in int32 and are cast back
    # to the input dtype (torch.sum would promote those sums to int64).
    ndim = x.ndim
    if dim < 0:
        dim += ndim
    assert 0 <= dim < ndim, "dim out of range"
    out_shape = x.shape[:dim] + x.shape[dim + 1:]

    B = 1
    for s in x.shape[:dim]:
        B *= s
    R = x.shape[dim]
    M = 1
    for s in x.shape[dim + 1:]:
        M *= s

    itemsize = jnp.dtype(x.dtype).itemsize
    pack = {1: 32, 2: 16}.get(itemsize, 8)
    acc_dtype = _acc_dtype(x.dtype)
    lane_cap = max(LANE, (max_lane_tile // LANE) * LANE)

    if M == 1:
        out = _sum_last_axis(x.reshape(B, R), B, R, itemsize, pack, acc_dtype,
                             block_bytes, lane_cap)
    else:
        out = _sum_general(x.reshape(B, R, M), B, R, M, itemsize, pack,
                           acc_dtype, block_bytes, lane_cap)
    return out.reshape(out_shape)


if __name__ == "__main__":
    key = jax.random.PRNGKey(0)

    # Main case, consistent with the module's NCHW usage: Sum(dim=1).
    x = jax.random.normal(key, (2, 4, 16, 16), dtype=jnp.float32)
    out = jax.block_until_ready(pallas_sum(x, 1))
    ref = jnp.sum(x, axis=1)
    assert out.shape == ref.shape, (out.shape, ref.shape)
    assert jnp.allclose(out, ref, atol=1e-5, rtol=1e-5)

    # Spatial-dim reduction (small trailing M) -> general path with b_tile fold.
    out2 = jax.block_until_ready(pallas_sum(x, 2))
    ref2 = jnp.sum(x, axis=2)
    assert out2.shape == ref2.shape
    assert jnp.allclose(out2, ref2, atol=1e-5, rtol=1e-5)

    # Last-axis reduction (M == 1) -> dedicated lane-dense path.
    out3 = jax.block_until_ready(pallas_sum(x, 3))
    ref3 = jnp.sum(x, axis=3)
    assert out3.shape == ref3.shape
    assert jnp.allclose(out3, ref3, atol=1e-5, rtol=1e-5)

    # Ragged lane count (M = 12*13 = 156, not a multiple of 128): pad-free
    # partial-lane-tile handling.
    y = jax.random.normal(jax.random.PRNGKey(1), (2, 4, 12, 13), jnp.float32)
    out4 = jax.block_until_ready(pallas_sum(y, 1))
    ref4 = jnp.sum(y, axis=1)
    assert out4.shape == ref4.shape
    assert jnp.allclose(out4, ref4, atol=1e-5, rtol=1e-5)

    # Force the multi-pass R path (tiny budget -> R tiling, ragged last tile
    # masked only on the final step).
    z = jax.random.normal(jax.random.PRNGKey(2), (2, 100, 256), jnp.float32)
    out5 = jax.block_until_ready(pallas_sum(z, 1, block_bytes=32 * 1024))
    ref5 = jnp.sum(z, axis=1)
    assert out5.shape == ref5.shape
    assert jnp.allclose(out5, ref5, atol=1e-4, rtol=1e-4)

    # Force the multi-pass last-axis path (R split across lane tiles).
    w = jax.random.normal(jax.random.PRNGKey(3), (2, 4, 300), jnp.float32)
    out6 = jax.block_until_ready(pallas_sum(w, 2, max_lane_tile=128))
    ref6 = jnp.sum(w, axis=2)
    assert out6.shape == ref6.shape
    assert jnp.allclose(out6, ref6, atol=1e-4, rtol=1e-4)

    print("KERNEL_OK")
</pallas_src>

<mosaic_0001>
module attributes {stable_mosaic.version = 11 : i64} {
  func.func @_sum_general_onepass_kernel(%arg0: i32, %arg1: i32, %arg2: memref<2x4x256xf32, #tpu.memory_space<vmem>>, %arg3: memref<2x1x256xf32, #tpu.memory_space<vmem>>) attributes {dimension_semantics = [#tpu.dimension_semantics<parallel>, #tpu.dimension_semantics<parallel>], iteration_bounds = array<i64: 1, 1>, scalar_prefetch = 0 : i64, scratch_operands = 0 : i64, tpu.core_type = #tpu.core_type<tc>, window_params = [{transform_indices = @transform_0, window_bounds = array<i64: 2, 4, 256>}, {transform_indices = @transform_1, window_bounds = array<i64: 2, 1, 256>}]} {
    %c0 = arith.constant 0 : index
    %c0_0 = arith.constant 0 : index
    %c0_1 = arith.constant 0 : index
    %0 = vector.load %arg2[%c0, %c0_0, %c0_1] : memref<2x4x256xf32, #tpu.memory_space<vmem>>, vector<2x4x256xf32>
    %cst = arith.constant dense<0.000000e+00> : vector<2x256xf32>
    %1 = vector.multi_reduction <add>, %0, %cst [1] : vector<2x4x256xf32> to vector<2x256xf32>
    %2 = vector.shape_cast %1 : vector<2x256xf32> to vector<2x1x256xf32>
    %c0_2 = arith.constant 0 : index
    %c0_3 = arith.constant 0 : index
    %c0_4 = arith.constant 0 : index
    %3 = vector.load %arg3[%c0_2, %c0_3, %c0_4] : memref<2x1x256xf32, #tpu.memory_space<vmem>>, vector<2x1x256xf32>
    tpu.vector_store %arg3[%c0_2, %c0_3, %c0_4], %2 {strides = array<i32>} : memref<2x1x256xf32, #tpu.memory_space<vmem>>, vector<2x1x256xf32>,
    return
  }
  func.func @transform_0(%arg0: i32, %arg1: i32) -> (i32, i32, i32) {
    %c0_i32 = arith.constant 0 : i32
    %c0_i32_0 = arith.constant 0 : i32
    return %arg0, %c0_i32, %arg1 : i32, i32, i32
  }
  func.func @transform_1(%arg0: i32, %arg1: i32) -> (i32, i32, i32) {
    %c0_i32 = arith.constant 0 : i32
    %c0_i32_0 = arith.constant 0 : i32
    return %arg0, %c0_i32, %arg1 : i32, i32, i32
  }
}

</mosaic_0001>

<bundles_post_ra>
// kernel: tpu_custom_call.1
= control target key start
LH: loop header
LB: loop body
LE: loop exit
PB: predicated region body
PF: predicated region fallthrough
CT: control target
= control target key end

     0   :  { %6 = vsyncpa [#allocation3], 0  ;;  %s217_s0 = inlined_call_operand.hbm [shape: f32[2,4,256], index: 0, kind: input, shape index: {}]   ;;  %s218_s1 = inlined_call_operand.hbm [shape: f32[2,1,256], index: 1, kind: output, shape index: {}]  }
   0x1   :  { %7 = vsyncpa [#allocation4], 0  ;;  %s176_s6 = smov [#allocation2]   ;;  %s128_s10 = scalar_lea.hbm %s217_s0, 256 }
   0x2   :  { %s13_s7 = sshll.u32 %s176_s6, 4  ;;  %p129_p0 = scmp.ne.s32.totalorder %s217_s0, %s128_s10  ;;  %s14_s7 = int_to_ptr.vmem [resolvable:$true] %s13_s7 }
   0x3   :  { %p132_p1 = scmp.lt.u32.totalorder %s128_s10, %s217_s0 }
   0x5   :  { %p134_p2 = pnand %p132_p1, %p129_p0 }
   0x7   :  { %137 = shalt.err (!%p134_p2)
}
   0x8   :  { %s138_s15 = scalar_lea.vmem %s14_s7, 256  ;;  %p143_p4 = scmp.lt.s32.totalorder %s14_s7, %s14_s7 }
   0x9   :  { %p139_p3 = scmp.ne.s32.totalorder %s14_s7, %s138_s15  ;;  %p144_p5 = scmp.lt.s32.totalorder %s138_s15, %s138_s15 }
   0xb   :  { %p145_p6 = por %p144_p5, %p143_p4 }
   0xd   :  { %p146_p7 = pnand %p145_p6, %p139_p3 }
   0xf   :  { %149 = shalt.err (!%p146_p7)
}
  0x10   :  { %s177_s16 = smov 128   ;;  %s178_s17 = smov 8  }
  0x11   :  { %19 = dma.hbm_to_vmem [thread:$0]  %s217_s0, 256, %s14_s7, [#allocation3], %s177_s16, %s177_s16, %s178_s17  }
  0x12   :  { %172 = dma.done.wait [#allocation3], 256  }
  0x13   :  { %173 = vsyncadd [#allocation3], 4294967040  ;;  %vm31_vm0 = vcmask 1043456   ;;  %v23_v0 = vld [vmem:[#allocation2] sm:$0xff]  ;;  %v24_v1 = vld [vmem:[#allocation2 + $0x8] sm:$0xff]  ;;  %v68_v16 = vlaneseq  ;;  %s180_s0 = smov [#allocation5]  }
  0x14   :  { %v27_v2 = vcombine.high %v23_v0, %v23_v0  ;;  %v32_v3 = vsel %vm31_vm0, %v23_v0, 0.0  ;;  %v28_v4 = vcombine.high %v24_v1, %v24_v1  ;;  %v46_v5 = vsel %vm31_vm0, %v24_v1, 0.0  ;;  %s107_s20 = sshll.u32 %s180_s0, 4  ;;  %s108_s20 = int_to_ptr.vmem [resolvable:$true] %s107_s20 }
  0x15   :  { %v33_v6 = vrot.slane %v32_v3, 4  ;;  %v47_v7 = vrot.slane %v46_v5, 4  ;;  %v179_v14 = vmov 1966171168   ;;  %v69_v26 = vshrl.u32 %v68_v16, 7  ;;  %s150_s21 = scalar_lea.vmem %s108_s20, 64  ;;  %p155_p9 = scmp.lt.s32.totalorder %s108_s20, %s108_s20 }
  0x16   :  { %v39_v8 = vsel %vm31_vm0, %v27_v2, 0.0  ;;  %v53_v9 = vsel %vm31_vm0, %v28_v4, 0.0  ;;  %v66_v15 = vunpack.c.l.s4 %v179_v14  ;;  %vm98_vm1 = vcmp.lt.s32.totalorder %v68_v16, 256  ;;  %p151_p8 = scmp.ne.s32.totalorder %s108_s20, %s150_s21  ;;  %p156_p10 = scmp.lt.s32.totalorder %s150_s21, %s150_s21 }
  0x17   :  { %v34_v10 = vadd.f32 %v33_v6, %v32_v3  ;;  %v40_v11 = vrot.slane %v39_v8, 4  ;;  %v48_v12 = vadd.f32 %v47_v7, %v46_v5  ;;  %v54_v13 = vrot.slane %v53_v9, 4 }
  0x18   :  { %v67_v25 = vunpack.c.0.s8 %v66_v15  ;;  %p157_p11 = por %p156_p10, %p155_p9 }
  0x19   :  { %v35_v17 = vrot.slane %v34_v10, 2  ;;  %v41_v18 = vadd.f32 %v40_v11, %v39_v8  ;;  %v49_v19 = vrot.slane %v48_v12, 2  ;;  %v55_v20 = vadd.f32 %v54_v13, %v53_v9 }
  0x1a   :  { %v70_v36 = vsub.s32 %v67_v25, %v69_v26  ;;  %p158_p12 = pnand %p157_p11, %p151_p8 }
  0x1b   :  { %v36_v21 = vadd.f32 %v35_v17, %v34_v10  ;;  %v42_v22 = vrot.slane %v41_v18, 2  ;;  %v50_v23 = vadd.f32 %v49_v19, %v48_v12  ;;  %v56_v24 = vrot.slane %v55_v20, 2 }
  0x1d   :  { %v37_v27 = vrot.slane %v36_v21, 1  ;;  %v43_v28 = vadd.f32 %v42_v22, %v41_v18  ;;  %v51_v29 = vrot.slane %v50_v23, 1  ;;  %v57_v30 = vadd.f32 %v56_v24, %v55_v20 }
  0x1f   :  { %v38_v31 = vadd.f32 %v37_v27, %v36_v21  ;;  %v44_v32 = vrot.slane %v43_v28, 1  ;;  %v52_v33 = vadd.f32 %v51_v29, %v50_v23  ;;  %v58_v34 = vrot.slane %v57_v30, 1 }
  0x21   :  { %v45_v35 = vadd.f32 %v44_v32, %v43_v28  ;;  %v59_v37 = vadd.f32 %v58_v34, %v57_v30 }
  0x23   :  { %v64_v38 = vcombine.low %v38_v31, %v45_v35  ;;  %v79_v39 = vcombine.low %v52_v33, %v59_v37 }
  0x25   :  { %v71_v40 = vrot.slane %v64_v38, %v70_v36  ;;  %v86_v41 = vrot.slane %v79_v39, %v70_v36 }
  0x27   :  { %v78_v42 = vrot.slane %v71_v40, %v70_v36  ;;  %v93_v43 = vrot.slane %v86_v41, %v70_v36 }
  0x29   :  { %100 = vst.msk [vmem:[#allocation5] sm:$0x3] %vm98_vm1, %v78_v42  ;;  %101 = vst.msk [vmem:[#allocation5 + $0x2] sm:$0x3] %vm98_vm1, %v93_v43 }
  0x2a   :  { %161 = shalt.err (!%p158_p12)
}
  0x2b   :  { %s162_s24 = scalar_lea.hbm %s218_s1, 64 }
  0x2c   :  { %p163_p13 = scmp.ne.s32.totalorder %s218_s1, %s162_s24  ;;  %p166_p0 = scmp.lt.u32.totalorder %s162_s24, %s218_s1 }
  0x2e   :  { %p168_p1 = pnand %p166_p0, %p163_p13 }
  0x30   :  { %171 = shalt.err (!%p168_p1)
}
  0x31   :  { %s181_s29 = smov 32   ;;  %s182_s30 = smov 2  }
  0x32   :  { %113 = dma.vmem_to_hbm [thread:$0]  %s108_s20, 64, %s218_s1, [#allocation4], %s181_s29, %s181_s29, %s182_s30  }
  0x33   :  { %174 = dma.done.wait [#allocation4], 64  }
  0x34   :  { %175 = vsyncadd [#allocation4], 4294967232 }
  0x35   :  { %117 = vsyncpa [#allocation3], 1 }
  0x36   :  { %118 = vsyncpa [#allocation4], 1 }

</bundles_post_ra>
